<compile_context>
chip_gen: v7x
topology: tpu7x:2x2x1
jax: 0.10.0
libtpu: 0.0.40
codegen_flags: <defaults>
</compile_context>

<pallas_src>
import jax
import jax.numpy as jnp
from jax.experimental import pallas as pl
from jax.experimental.pallas import tpu as pltpu


# ---------------------------------------------------------------------------
# Fused Pallas kernel: 3x GCNConv (+relu) -> (folded) mean pool -> linear head
# ---------------------------------------------------------------------------
def fused_gcn_kernel(x_ref, a_ref, pa_ref, w1_ref, w23_ref, b_ref, wlb_ref, o_ref):
    f32, bf16 = jnp.float32, jnp.bfloat16

    a = a_ref[...].astype(bf16)           # cast once in-kernel, reused for conv1/conv2
    b = b_ref[...]                        # [3, H] f32, biases stay f32
    wlb = wlb_ref[...]                    # [H+1, C] f32

    # conv1: relu(A @ X @ W1 + b1); contract (A @ X) first since F_in < H.
    ax = jnp.dot(a, x_ref[...].astype(bf16), preferred_element_type=f32)      # [N, F_in]
    h = jnp.dot(ax.astype(bf16), w1_ref[...].astype(bf16),
                preferred_element_type=f32) + b[0:1, :]
    h_bf = jnp.maximum(h, 0.0).astype(bf16)                                   # [N, H] bf16

    # conv2: relu(A @ (H @ W2) + b2)
    hw = jnp.dot(h_bf, w23_ref[0].astype(bf16), preferred_element_type=f32)
    h = jnp.dot(a, hw.astype(bf16), preferred_element_type=f32) + b[1:2, :]
    h_bf = jnp.maximum(h, 0.0).astype(bf16)

    # conv3 + global mean pool folded: pooled = (P @ A) @ (H @ W3) + b3
    # (no ReLU on conv3; pool rows sum to 1 so pool @ b3 == b3)
    hw = jnp.dot(h_bf, w23_ref[1].astype(bf16), preferred_element_type=f32)
    pooled = jnp.dot(pa_ref[...].astype(bf16), hw.astype(bf16),
                     preferred_element_type=f32) + b[2:3, :]                  # [G, H]

    # linear head (dropout is identity in eval mode); wlb = [W_lin ; b_lin]
    out = jnp.dot(pooled.astype(bf16), wlb[:-1, :].astype(bf16),
                  preferred_element_type=f32) + wlb[-1:, :]
    o_ref[...] = out.astype(o_ref.dtype)


# ---------------------------------------------------------------------------
# Wrapper: one pallas_call, everything resident in VMEM (tiny shapes)
# ---------------------------------------------------------------------------
def gcn_forward(packed, x, a_norm, pa):
    n, f_in = x.shape
    hidden = packed["w1"].shape[1]
    g = pa.shape[0]
    c = packed["wlb"].shape[1]

    args = (x, a_norm, pa, packed["w1"], packed["w23"], packed["b"], packed["wlb"])

    flops = (2 * n * n * f_in + 2 * n * f_in * hidden          # conv1 (reordered)
             + 2 * n * hidden * hidden + 2 * n * n * hidden    # conv2
             + 2 * n * hidden * hidden + 2 * g * n * hidden    # conv3 + folded pool
             + 2 * g * hidden * c)                             # head
    bytes_accessed = sum(int(a.size) * a.dtype.itemsize for a in args) + g * c * 4

    return pl.pallas_call(
        fused_gcn_kernel,
        out_shape=jax.ShapeDtypeStruct((g, c), jnp.float32),
        in_specs=[pl.BlockSpec(memory_space=pltpu.MemorySpace.VMEM) for _ in args],
        out_specs=pl.BlockSpec(memory_space=pltpu.MemorySpace.VMEM),
        cost_estimate=pl.CostEstimate(flops=flops, transcendentals=0,
                                      bytes_accessed=bytes_accessed),
    )(*args)


# ---------------------------------------------------------------------------
# One-time parameter packing (init time, NOT in the per-call hot path)
# ---------------------------------------------------------------------------
def pack_params(params):
    return {
        "w1": params["w1"],                                               # [F_in, H]
        "w23": jnp.stack([params["w2"], params["w3"]], axis=0),           # [2, H, H]
        "b": jnp.concatenate([params["b1"], params["b2"], params["b3"]]), # [3, H]
        "wlb": jnp.concatenate([params["wl"], params["bl"]], axis=0),     # [H+1, C]
    }


# ---------------------------------------------------------------------------
# Plain-JAX glue: graph preprocessing (adjacency normalization, pooling matrix)
# ---------------------------------------------------------------------------
def build_norm_adj(edge_index, num_nodes):
    """Dense D^-1/2 (A + I) D^-1/2 from an undirected edge_index [2, E]."""
    src, dst = edge_index[0], edge_index[1]
    # scatter-add so duplicate edges contribute to the degree (PyG semantics);
    # assumes edge_index already contains both directions of each edge.
    adj = jnp.zeros((num_nodes, num_nodes), jnp.float32).at[dst, src].add(1.0)
    adj = adj + jnp.eye(num_nodes, dtype=jnp.float32)        # self loops
    deg = adj.sum(axis=1)
    dinv = 1.0 / jnp.sqrt(deg)
    return adj * dinv[:, None] * dinv[None, :]


def build_pool_matrix(batch, num_graphs):
    """pool[g, n] = 1/|V_g| if node n belongs to graph g else 0."""
    onehot = (batch[None, :] == jnp.arange(num_graphs)[:, None]).astype(jnp.float32)
    counts = onehot.sum(axis=1, keepdims=True)
    return onehot / jnp.maximum(counts, 1.0)


def preprocess_graph(edge_index, batch, num_graphs, num_nodes):
    """Once per batch: normalized adjacency and the folded pool@A matrix."""
    a_norm = build_norm_adj(edge_index, num_nodes)
    pool_mat = build_pool_matrix(batch, num_graphs)
    pa = pool_mat @ a_norm                                   # [G, N]
    return a_norm, pool_mat, pa


# ---------------------------------------------------------------------------
# Pure-JAX f32 reference (same math as the PyTorch module) for a sanity check
# ---------------------------------------------------------------------------
def gcn_forward_ref(params, x, a_norm, pool_mat):
    h = jnp.maximum(a_norm @ (x @ params["w1"]) + params["b1"], 0.0)
    h = jnp.maximum(a_norm @ (h @ params["w2"]) + params["b2"], 0.0)
    h = a_norm @ (h @ params["w3"]) + params["b3"]
    pooled = pool_mat @ h
    return pooled @ params["wl"] + params["bl"]


if __name__ == "__main__":
    # MUTAG-like shapes, batched so the MXU M / sublane axis is actually used.
    NUM_GRAPHS = 8
    NODES_PER_GRAPH = 16
    N = NUM_GRAPHS * NODES_PER_GRAPH          # 128 nodes total
    NUM_FEATURES = 8                          # node feature dim
    HIDDEN = 32                               # hidden_channels
    NUM_CLASSES = 2                           # MUTAG has 2 classes

    # Deterministic graph structure: a ring inside each graph (undirected).
    src, dst = [], []
    for g in range(NUM_GRAPHS):
        base = g * NODES_PER_GRAPH
        for i in range(NODES_PER_GRAPH):
            j = (i + 1) % NODES_PER_GRAPH
            src += [base + i, base + j]
            dst += [base + j, base + i]
    edge_index = jnp.array([src, dst], dtype=jnp.int32)       # [2, E]
    batch = jnp.repeat(jnp.arange(NUM_GRAPHS, dtype=jnp.int32), NODES_PER_GRAPH)

    # Deterministic parameters / inputs.
    key = jax.random.PRNGKey(0)
    kx, k1, k2, k3, kl, kbl = jax.random.split(key, 6)
    x = jax.random.normal(kx, (N, NUM_FEATURES), jnp.float32)

    def glorot(k, shape):
        lim = jnp.sqrt(6.0 / (shape[0] + shape[1]))
        return jax.random.uniform(k, shape, jnp.float32, -lim, lim)

    params = {
        "w1": glorot(k1, (NUM_FEATURES, HIDDEN)),
        "b1": jnp.zeros((1, HIDDEN), jnp.float32),
        "w2": glorot(k2, (HIDDEN, HIDDEN)),
        "b2": jnp.zeros((1, HIDDEN), jnp.float32),
        "w3": glorot(k3, (HIDDEN, HIDDEN)),
        "b3": jnp.zeros((1, HIDDEN), jnp.float32),
        "wl": glorot(kl, (HIDDEN, NUM_CLASSES)),
        "bl": jax.random.uniform(kbl, (1, NUM_CLASSES), jnp.float32,
                                 -1.0 / jnp.sqrt(HIDDEN), 1.0 / jnp.sqrt(HIDDEN)),
    }

    packed = pack_params(params)                               # one-time, off hot path
    a_norm, pool_mat, pa = preprocess_graph(edge_index, batch, NUM_GRAPHS, N)

    out = jax.block_until_ready(gcn_forward(packed, x, a_norm, pa))
    ref = gcn_forward_ref(params, x, a_norm, pool_mat)
    assert out.shape == (NUM_GRAPHS, NUM_CLASSES)
    # bf16 MXU inputs with f32 accumulation -> ~1% relative error vs f32 reference.
    assert jnp.allclose(out, ref, atol=5e-2, rtol=5e-2), (out, ref)
    print("KERNEL_OK")
</pallas_src>

<mosaic_0001>
module attributes {stable_mosaic.version = 11 : i64} {
  func.func @fused_gcn_kernel(%arg0: memref<128x8xf32, #tpu.memory_space<vmem>>, %arg1: memref<128x128xf32, #tpu.memory_space<vmem>>, %arg2: memref<8x128xf32, #tpu.memory_space<vmem>>, %arg3: memref<8x32xf32, #tpu.memory_space<vmem>>, %arg4: memref<2x32x32xf32, #tpu.memory_space<vmem>>, %arg5: memref<3x32xf32, #tpu.memory_space<vmem>>, %arg6: memref<33x2xf32, #tpu.memory_space<vmem>>, %arg7: memref<8x2xf32, #tpu.memory_space<vmem>>) attributes {dimension_semantics = [], scalar_prefetch = 0 : i64, scratch_operands = 0 : i64, tpu.core_type = #tpu.core_type<tc>} {
    %c0 = arith.constant 0 : index
    %c0_0 = arith.constant 0 : index
    %0 = vector.load %arg1[%c0, %c0_0] : memref<128x128xf32, #tpu.memory_space<vmem>>, vector<128x128xf32>
    %1 = arith.truncf %0 : vector<128x128xf32> to vector<128x128xbf16>
    %c0_1 = arith.constant 0 : index
    %c0_2 = arith.constant 0 : index
    %2 = vector.load %arg5[%c0_1, %c0_2] : memref<3x32xf32, #tpu.memory_space<vmem>>, vector<3x32xf32>
    %c0_3 = arith.constant 0 : index
    %c0_4 = arith.constant 0 : index
    %3 = vector.load %arg6[%c0_3, %c0_4] : memref<33x2xf32, #tpu.memory_space<vmem>>, vector<33x2xf32>
    %c0_5 = arith.constant 0 : index
    %c0_6 = arith.constant 0 : index
    %4 = vector.load %arg0[%c0_5, %c0_6] : memref<128x8xf32, #tpu.memory_space<vmem>>, vector<128x8xf32>
    %5 = arith.truncf %4 : vector<128x8xf32> to vector<128x8xbf16>
    %cst = arith.constant dense<0.000000e+00> : vector<128x8xf32>
    %6 = tpu.matmul %1, %5, %cst {dimension_numbers = #tpu.dot_dimension_numbers<[1], [0], [0], [1], [0, 0, 1, 1], [], []>} : vector<128x128xbf16>, vector<128x8xbf16>, vector<128x8xf32> -> vector<128x8xf32>
    %7 = arith.truncf %6 : vector<128x8xf32> to vector<128x8xbf16>
    %c0_7 = arith.constant 0 : index
    %c0_8 = arith.constant 0 : index
    %8 = vector.load %arg3[%c0_7, %c0_8] : memref<8x32xf32, #tpu.memory_space<vmem>>, vector<8x32xf32>
    %9 = arith.truncf %8 : vector<8x32xf32> to vector<8x32xbf16>
    %cst_9 = arith.constant dense<0.000000e+00> : vector<128x32xf32>
    %10 = tpu.matmul %7, %9, %cst_9 {dimension_numbers = #tpu.dot_dimension_numbers<[1], [0], [0], [1], [0, 0, 1, 1], [], []>} : vector<128x8xbf16>, vector<8x32xbf16>, vector<128x32xf32> -> vector<128x32xf32>
    %11 = vector.extract_strided_slice %2 {offsets = [0, 0], sizes = [1, 32], strides = [1, 1]} : vector<3x32xf32> to vector<1x32xf32>
    %12 = vector.broadcast %11 : vector<1x32xf32> to vector<128x32xf32>
    %13 = arith.addf %10, %12 : vector<128x32xf32>
    %cst_10 = arith.constant 0.000000e+00 : f32
    %14 = vector.broadcast %cst_10 : f32 to vector<128x32xf32>
    %15 = arith.maximumf %13, %14 : vector<128x32xf32>
    %16 = arith.truncf %15 : vector<128x32xf32> to vector<128x32xbf16>
    %c0_11 = arith.constant 0 : index
    %c0_12 = arith.constant 0 : index
    %c0_13 = arith.constant 0 : index
    %17 = vector.load %arg4[%c0_11, %c0_12, %c0_13] : memref<2x32x32xf32, #tpu.memory_space<vmem>>, vector<1x32x32xf32>
    %18 = vector.shape_cast %17 : vector<1x32x32xf32> to vector<32x32xf32>
    %19 = arith.truncf %18 : vector<32x32xf32> to vector<32x32xbf16>
    %cst_14 = arith.constant dense<0.000000e+00> : vector<128x32xf32>
    %20 = tpu.matmul %16, %19, %cst_14 {dimension_numbers = #tpu.dot_dimension_numbers<[1], [0], [0], [1], [0, 0, 1, 1], [], []>} : vector<128x32xbf16>, vector<32x32xbf16>, vector<128x32xf32> -> vector<128x32xf32>
    %21 = arith.truncf %20 : vector<128x32xf32> to vector<128x32xbf16>
    %cst_15 = arith.constant dense<0.000000e+00> : vector<128x32xf32>
    %22 = tpu.matmul %1, %21, %cst_15 {dimension_numbers = #tpu.dot_dimension_numbers<[1], [0], [0], [1], [0, 0, 1, 1], [], []>} : vector<128x128xbf16>, vector<128x32xbf16>, vector<128x32xf32> -> vector<128x32xf32>
    %23 = vector.extract_strided_slice %2 {offsets = [1, 0], sizes = [1, 32], strides = [1, 1]} : vector<3x32xf32> to vector<1x32xf32>
    %24 = vector.broadcast %23 : vector<1x32xf32> to vector<128x32xf32>
    %25 = arith.addf %22, %24 : vector<128x32xf32>
    %cst_16 = arith.constant 0.000000e+00 : f32
    %26 = vector.broadcast %cst_16 : f32 to vector<128x32xf32>
    %27 = arith.maximumf %25, %26 : vector<128x32xf32>
    %28 = arith.truncf %27 : vector<128x32xf32> to vector<128x32xbf16>
    %c1 = arith.constant 1 : index
    %c0_17 = arith.constant 0 : index
    %c0_18 = arith.constant 0 : index
    %29 = vector.load %arg4[%c1, %c0_17, %c0_18] : memref<2x32x32xf32, #tpu.memory_space<vmem>>, vector<1x32x32xf32>
    %30 = vector.shape_cast %29 : vector<1x32x32xf32> to vector<32x32xf32>
    %31 = arith.truncf %30 : vector<32x32xf32> to vector<32x32xbf16>
    %cst_19 = arith.constant dense<0.000000e+00> : vector<128x32xf32>
    %32 = tpu.matmul %28, %31, %cst_19 {dimension_numbers = #tpu.dot_dimension_numbers<[1], [0], [0], [1], [0, 0, 1, 1], [], []>} : vector<128x32xbf16>, vector<32x32xbf16>, vector<128x32xf32> -> vector<128x32xf32>
    %c0_20 = arith.constant 0 : index
    %c0_21 = arith.constant 0 : index
    %33 = vector.load %arg2[%c0_20, %c0_21] : memref<8x128xf32, #tpu.memory_space<vmem>>, vector<8x128xf32>
    %34 = arith.truncf %33 : vector<8x128xf32> to vector<8x128xbf16>
    %35 = arith.truncf %32 : vector<128x32xf32> to vector<128x32xbf16>
    %cst_22 = arith.constant dense<0.000000e+00> : vector<8x32xf32>
    %36 = tpu.matmul %34, %35, %cst_22 {dimension_numbers = #tpu.dot_dimension_numbers<[1], [0], [0], [1], [0, 0, 1, 1], [], []>} : vector<8x128xbf16>, vector<128x32xbf16>, vector<8x32xf32> -> vector<8x32xf32>
    %37 = vector.extract_strided_slice %2 {offsets = [2, 0], sizes = [1, 32], strides = [1, 1]} : vector<3x32xf32> to vector<1x32xf32>
    %38 = vector.broadcast %37 : vector<1x32xf32> to vector<8x32xf32>
    %39 = arith.addf %36, %38 : vector<8x32xf32>
    %40 = arith.truncf %39 : vector<8x32xf32> to vector<8x32xbf16>
    %41 = vector.extract_strided_slice %3 {offsets = [0, 0], sizes = [32, 2], strides = [1, 1]} : vector<33x2xf32> to vector<32x2xf32>
    %42 = arith.truncf %41 : vector<32x2xf32> to vector<32x2xbf16>
    %cst_23 = arith.constant dense<0.000000e+00> : vector<8x2xf32>
    %43 = tpu.matmul %40, %42, %cst_23 {dimension_numbers = #tpu.dot_dimension_numbers<[1], [0], [0], [1], [0, 0, 1, 1], [], []>} : vector<8x32xbf16>, vector<32x2xbf16>, vector<8x2xf32> -> vector<8x2xf32>
    %44 = vector.extract_strided_slice %3 {offsets = [32, 0], sizes = [1, 2], strides = [1, 1]} : vector<33x2xf32> to vector<1x2xf32>
    %45 = vector.broadcast %44 : vector<1x2xf32> to vector<8x2xf32>
    %46 = arith.addf %43, %45 : vector<8x2xf32>
    %c0_24 = arith.constant 0 : index
    %c0_25 = arith.constant 0 : index
    %47 = vector.load %arg7[%c0_24, %c0_25] : memref<8x2xf32, #tpu.memory_space<vmem>>, vector<8x2xf32>
    tpu.vector_store %arg7[%c0_24, %c0_25], %46 {strides = array<i32>} : memref<8x2xf32, #tpu.memory_space<vmem>>, vector<8x2xf32>,
    return
  }
}

</mosaic_0001>

<bundles_post_ra>
// kernel: tpu_custom_call.1
= control target key start
LH: loop header
LB: loop body
LE: loop exit
PB: predicated region body
PF: predicated region fallthrough
CT: control target
= control target key end

     0   :  { %12 = vsyncpa [#allocation3], 0  ;;  %s1445_s0 = inlined_call_operand.vmem [shape: f32[128,8], index: 0, kind: input, shape index: {}]   ;;  %s1446_s1 = inlined_call_operand.vmem [shape: f32[128,128], index: 1, kind: input, shape index: {}]   ;;  %s1447_s2 = inlined_call_operand.hbm [shape: f32[8,128], index: 2, kind: input, shape index: {}]   ;;  %s1448_s3 = inlined_call_operand.hbm [shape: f32[8,32], index: 3, kind: input, shape index: {}]   ;;  %s1449_s4 = inlined_call_operand.vmem [shape: f32[2,32,32], index: 4, kind: input, shape index: {}]   ;;  %s1450_s5 = inlined_call_operand.vmem [shape: f32[3,32], index: 5, kind: input, shape index: {}]   ;;  %s1451_s6 = inlined_call_operand.vmem [shape: f32[33,2], index: 6, kind: input, shape index: {}]   ;;  %s1452_s7 = inlined_call_operand.vmem [shape: f32[8,2], index: 7, kind: output, shape index: {}]  }
   0x1   :  { %13 = vsyncpa [#allocation5], 0  ;;  %s1173_s24 = smov [#allocation2]   ;;  %s1174_s26 = smov [#allocation4]  }
   0x2   :  { %s24_s25 = sshll.u32 %s1173_s24, 4  ;;  %s34_s27 = sshll.u32 %s1174_s26, 4  ;;  %s25_s25 = int_to_ptr.vmem [resolvable:$true] %s24_s25  ;;  %s35_s27 = int_to_ptr.vmem [resolvable:$true] %s34_s27 }
   0x3   :  { %s1125_s30 = scalar_lea.hbm %s1447_s2, 128 }
   0x4   :  { %p1126_p0 = scmp.ne.s32.totalorder %s1447_s2, %s1125_s30  ;;  %p1129_p1 = scmp.lt.u32.totalorder %s1125_s30, %s1447_s2 }
   0x6   :  { %p1131_p2 = pnand %p1129_p1, %p1126_p0 }
   0x8   :  { %1134 = shalt.err (!%p1131_p2)
}
   0x9   :  { %s1135_s12 = scalar_lea.vmem %s25_s25, 128  ;;  %p1140_p4 = scmp.lt.s32.totalorder %s25_s25, %s25_s25 }
   0xa   :  { %p1136_p3 = scmp.ne.s32.totalorder %s25_s25, %s1135_s12  ;;  %p1141_p5 = scmp.lt.s32.totalorder %s1135_s12, %s1135_s12 }
   0xc   :  { %p1142_p6 = por %p1141_p5, %p1140_p4 }
   0xe   :  { %p1143_p7 = pnand %p1142_p6, %p1136_p3 }
  0x10   :  { %1146 = shalt.err (!%p1143_p7)
}
  0x11   :  { %27 = dma.hbm_to_vmem [thread:$0]  %s1447_s2, 128, %s25_s25, [#allocation3]  }
  0x12   :  { %s1147_s17 = scalar_lea.hbm %s1448_s3, 128 }
  0x13   :  { %p1148_p8 = scmp.ne.s32.totalorder %s1448_s3, %s1147_s17  ;;  %p1151_p9 = scmp.lt.u32.totalorder %s1147_s17, %s1448_s3 }
  0x15   :  { %p1153_p10 = pnand %p1151_p9, %p1148_p8 }
  0x17   :  { %1156 = shalt.err (!%p1153_p10)
}
  0x18   :  { %s1157_s22 = scalar_lea.vmem %s35_s27, 128  ;;  %p1162_p12 = scmp.lt.s32.totalorder %s35_s27, %s35_s27 }
  0x19   :  { %p1158_p11 = scmp.ne.s32.totalorder %s35_s27, %s1157_s22  ;;  %p1163_p13 = scmp.lt.s32.totalorder %s1157_s22, %s1157_s22 }
  0x1b   :  { %p1164_p0 = por %p1163_p13, %p1162_p12 }
  0x1d   :  { %p1165_p1 = pnand %p1164_p0, %p1158_p11 }
  0x1f   :  { %1168 = shalt.err (!%p1165_p1)
}
  0x20   :  { %37 = dma.hbm_to_vmem [thread:$0]  %s1448_s3, 128, %s35_s27, [#allocation5]  }
  0x21   :  { %1169 = dma.done.wait [#allocation3], 128  }
  0x22   :  { %1170 = vsyncadd [#allocation3], 4294967168 }
  0x23   :  { %1171 = dma.done.wait [#allocation5], 128  }
  0x24   :  { %1172 = vsyncadd [#allocation5], 4294967168  ;;  %v81_v0 = vld [vmem:[%s1445_s0] sm:$0xff]  ;;  %v82_v1 = vld [vmem:[%s1445_s0 + $0x8] sm:$0xff]  ;;  %vm241_vm0 = vcmask 1043456   ;;  %vm216_vm1 = vcmask 64512  }
  0x25   :  { %v83_v2 = vld [vmem:[%s1445_s0 + $0x10] sm:$0xff]  ;;  %v97_v3 = vpack.c.bf16 %v82_v1, %v81_v0  ;;  %v84_v4 = vld [vmem:[%s1445_s0 + $0x18] sm:$0xff]  ;;  %v85_v6 = vld [vmem:[%s1445_s0 + $0x20] sm:$0xff]  ;;  %vm372_vm2 = vcmask 261120   ;;  %vm1176_vm3 = vmmov 0   ;;  %vm859_vm4 = vcmask 15360  }
  0x26   :  { %v98_v5 = vpack.c.bf16 %v84_v4, %v83_v2  ;;  %v86_v7 = vld [vmem:[%s1445_s0 + $0x28] sm:$0xff]  ;;  %v51_v9 = vld [vmem:[%s1446_s1] sm:$0xff]  ;;  %v87_v11 = vld [vmem:[%s1445_s0 + $0x30] sm:$0xff] }
  0x27   :  { %970 = vmatprep.subr.bf16.mxu0 %v97_v3  ;;  %v99_v8 = vpack.c.bf16 %v86_v7, %v85_v6  ;;  %v52_v10 = vld [vmem:[%s1446_s1 + $0x8] sm:$0xff]  ;;  %v88_v12 = vld [vmem:[%s1445_s0 + $0x38] sm:$0xff]  ;;  %v89_v15 = vld [vmem:[%s1445_s0 + $0x40] sm:$0xff] }
  0x28   :  { %971 = vmatpush3.bf16.msra.mxu0 %v97_v3  ;;  %v67_v13 = vpack.c.bf16 %v52_v10, %v51_v9  ;;  %v100_v14 = vpack.c.bf16 %v88_v12, %v87_v11  ;;  %v90_v16 = vld [vmem:[%s1445_s0 + $0x48] sm:$0xff]  ;;  %v91_v18 = vld [vmem:[%s1445_s0 + $0x50] sm:$0xff]  ;;  %v92_v19 = vld [vmem:[%s1445_s0 + $0x58] sm:$0xff] }
  0x29   :  { %972 = vmatprep.subr.bf16.mxu0 %v98_v5  ;;  %v101_v17 = vpack.c.bf16 %v90_v16, %v89_v15  ;;  %v102_v20 = vpack.c.bf16 %v92_v19, %v91_v18  ;;  %v93_v21 = vld [vmem:[%s1445_s0 + $0x60] sm:$0xff]  ;;  %v94_v22 = vld [vmem:[%s1445_s0 + $0x68] sm:$0xff]  ;;  %v95_v24 = vld [vmem:[%s1445_s0 + $0x70] sm:$0xff] }
  0x2a   :  { %986 = vmatprep.mubr.bf16.mxu0 %v67_v13  ;;  %v103_v23 = vpack.c.bf16 %v94_v22, %v93_v21  ;;  %v96_v25 = vld [vmem:[%s1445_s0 + $0x78] sm:$0xff]  ;;  %v53_v27 = vld [vmem:[%s1446_s1 + $0x10] sm:$0xff]  ;;  %v55_v29 = vld [vmem:[%s1446_s1 + $0x20] sm:$0xff] }
  0x2b   :  { %v104_v26 = vpack.c.bf16 %v96_v25, %v95_v24  ;;  %v54_v28 = vld [vmem:[%s1446_s1 + $0x18] sm:$0xff]  ;;  %v56_v30 = vld [vmem:[%s1446_s1 + $0x28] sm:$0xff]  ;;  %v57_v33 = vld [vmem:[%s1446_s1 + $0x30] sm:$0xff] }
  0x2c   :  { %973 = vmatpush3.bf16.msra.mxu0 %v98_v5  ;;  %v1307_v31 = vpack.c.bf16 %v54_v28, %v53_v27  ;;  %v1309_v32 = vpack.c.bf16 %v56_v30, %v55_v29  ;;  %v58_v34 = vld [vmem:[%s1446_s1 + $0x38] sm:$0xff]  ;;  %v59_v35 = vld [vmem:[%s1446_s1 + $0x40] sm:$0xff]  ;;  %v60_v36 = vld [vmem:[%s1446_s1 + $0x48] sm:$0xff] }
  0x2d   :  { %974 = vmatprep.subr.bf16.mxu0 %v99_v8  ;;  %v1325_v37 = vpack.c.bf16 %v58_v34, %v57_v33  ;;  %v1327_v38 = vpack.c.bf16 %v60_v36, %v59_v35  ;;  %v61_v39 = vld [vmem:[%s1446_s1 + $0x50] sm:$0xff]  ;;  %v62_v40 = vld [vmem:[%s1446_s1 + $0x58] sm:$0xff]  ;;  %v63_v41 = vld [vmem:[%s1446_s1 + $0x60] sm:$0xff] }
  0x2e   :  { %v64_v42 = vld [vmem:[%s1446_s1 + $0x68] sm:$0xff]  ;;  %v1343_v43 = vpack.c.bf16 %v62_v40, %v61_v39  ;;  %v65_v45 = vld [vmem:[%s1446_s1 + $0x70] sm:$0xff]  ;;  %v66_v46 = vld [vmem:[%s1446_s1 + $0x78] sm:$0xff] }
  0x2f   :  { %v1345_v44 = vpack.c.bf16 %v64_v42, %v63_v41  ;;  %v1355_v47 = vpack.c.bf16 %v66_v46, %v65_v45  ;;  %v210_v48 = vld [vmem:[#allocation4] sm:$0xff]  ;;  %v366_v51 = vld [vmem:[%s1449_s4] sm:$0xff]  ;;  %v368_v57 = vld [vmem:[%s1449_s4 + $0x10] sm:$0xff] }
  0x30   :  { %975 = vmatpush3.bf16.msra.mxu0 %v99_v8  ;;  %v211_v49 = vpack.c.bf16 %v210_v48, %v210_v48  ;;  %v367_v52 = vld [vmem:[%s1449_s4 + $0x8] sm:$0xff]  ;;  %v369_v58 = vld [vmem:[%s1449_s4 + $0x18] sm:$0xff] }
  0x31   :  { %976 = vmatprep.subr.bf16.mxu0 %v100_v14  ;;  %v370_v53 = vpack.c.bf16 %v367_v52, %v366_v51  ;;  %v371_v62 = vpack.c.bf16 %v369_v58, %v368_v57 }
  0x32   :  { %1120 = vmatprep.subr.msk.bf16.mxu1 %vm241_vm0, %v211_v49  ;;  %v243_v50 = vsel %vm241_vm0, %v211_v49, 0 }
  0x33   :  { %1003 = vmatpush3.bf16.msra.mxu1 %v243_v50 }
  0x34   :  { %977 = vmatpush3.bf16.msra.mxu0 %v100_v14  ;;  %1020 = vmatprep.subr.bf16.mxu1 %v370_v53 }
  0x35   :  { %978 = vmatprep.subr.bf16.mxu0 %v101_v17 }
  0x38   :  { %979 = vmatpush3.bf16.msra.mxu0 %v101_v17  ;;  %v212_v17 = vlaneseq }
  0x39   :  { %980 = vmatprep.subr.bf16.mxu0 %v102_v20 }
  0x3a   :  { %v1378_v18 = vshrl.u32 %v212_v17, 7 }
  0x3c   :  { %981 = vmatpush3.bf16.msra.mxu0 %v102_v20  ;;  %v214_v19 = vsub.s32 0, %v1378_v18  ;;  %v1384_v20 = vld [vmem:[%s1450_s5] sm:$0x7] }
  0x3d   :  { %982 = vmatprep.subr.bf16.mxu0 %v103_v23 }
  0x3e   :  { %v215_v21 = vrot.slane %v1384_v20, %v214_v19 }
  0x40   :  { %983 = vmatpush3.bf16.msra.mxu0 %v103_v23 }
  0x41   :  { %984 = vmatprep.subr.bf16.mxu0 %v104_v26 }
  0x44   :  { %985 = vmatpush3.bf16.msra.mxu0 %v104_v26 }
  0x47   :  { %987 = vmatmul.mubr.bf16.vlgmr.msra.gmra.mrb[0].mxu0 %v1307_v31 }
  0x48   :  { %990 = vmatprep.mubr.bf16.mxu0 %v1309_v32 }
  0x4f   :  { %991 = vmatmul.mubr.bf16.gmra.mrb[4].mxu0 %v1325_v37 }
  0x50   :  { %994 = vmatprep.mubr.bf16.mxu0 %v1327_v38 }
  0x57   :  { %995 = vmatmul.mubr.bf16.gmra.mrb[8].mxu0 %v1343_v43 }
  0x58   :  { %998 = vmatprep.mubr.bf16.mxu0 %v1345_v44 }
  0x5f   :  { %999 = vmatmul.mubr.bf16.gmra.mrb[12].mxu0 %v1355_v47 }
  0x60   :  { %1056 = vmatprep.mubr.bf16.mxu0 %v67_v13 }
 0x11a   :  { %v988_v54 = vpop.f32.mrb[0].mxu0 }
 0x11b   :  { %v139_v55 = vpop.f32.mrb[1].mxu0 }
 0x11c   :  { %v989_v56 = vpop.f32.mrb[2].mxu0 }
 0x11d   :  { %v203_v59 = vpack.c.bf16 %v989_v56, %v988_v54  ;;  %v142_v60 = vpop.f32.mrb[3].mxu0 }
 0x11e   :  { %v202_v61 = vpack.c.bf16 %v142_v60, %v139_v55 }
 0x120   :  { %1004 = vmatprep.mubr.msk.bf16.mxu1 %vm216_vm1, %v202_v61 }
 0x121   :  { %1005 = vmatmul.mubr.msk.bf16.vlgmr.msra.gmra.mrb[0].mxu1 %vm216_vm1, %v203_v59 }
 0x122   :  { %v992_v63 = vpop.f32.mrb[4].mxu0  ;;  %1021 = vmatpush3.bf16.msra.mxu1 %v370_v53 }
 0x123   :  { %v155_v0 = vpop.f32.mrb[5].mxu0  ;;  %1022 = vmatprep.subr.bf16.mxu1 %v371_v62 }
 0x124   :  { %v993_v1 = vpop.f32.mrb[6].mxu0 }
 0x125   :  { %v205_v2 = vpack.c.bf16 %v993_v1, %v992_v63  ;;  %v158_v3 = vpop.f32.mrb[7].mxu0 }
 0x126   :  { %v204_v4 = vpack.c.bf16 %v158_v3, %v155_v0  ;;  %1023 = vmatpush3.bf16.msra.mxu1 %v371_v62 }
 0x128   :  { %1008 = vmatprep.mubr.msk.bf16.mxu1 %vm216_vm1, %v204_v4 }
 0x129   :  { %1009 = vmatmul.mubr.msk.bf16.gmra.mrb[4].mxu1 %vm216_vm1, %v205_v2 }
 0x12a   :  { %v996_v5 = vpop.f32.mrb[8].mxu0 }
 0x12b   :  { %v171_v6 = vpop.f32.mrb[9].mxu0 }
 0x12c   :  { %v997_v7 = vpop.f32.mrb[10].mxu0 }
 0x12d   :  { %v207_v8 = vpack.c.bf16 %v997_v7, %v996_v5  ;;  %v174_v9 = vpop.f32.mrb[11].mxu0 }
 0x12e   :  { %v206_v10 = vpack.c.bf16 %v174_v9, %v171_v6 }
 0x130   :  { %1012 = vmatprep.mubr.msk.bf16.mxu1 %vm216_vm1, %v206_v10 }
 0x131   :  { %1013 = vmatmul.mubr.msk.bf16.gmra.mrb[8].mxu1 %vm216_vm1, %v207_v8 }
 0x132   :  { %v1000_v11 = vpop.f32.mrb[12].mxu0 }
 0x133   :  { %v187_v12 = vpop.f32.mrb[13].mxu0 }
 0x134   :  { %v1001_v13 = vpop.f32.mrb[14].mxu0 }
 0x135   :  { %v209_v14 = vpack.c.bf16 %v1001_v13, %v1000_v11  ;;  %v190_v15 = vpop.f32.mrb[15].mxu0 }
 0x136   :  { %v208_v16 = vpack.c.bf16 %v190_v15, %v187_v12 }
 0x138   :  { %1016 = vmatprep.mubr.msk.bf16.mxu1 %vm216_vm1, %v208_v16 }
 0x139   :  { %1017 = vmatmul.mubr.msk.bf16.gmra.mrb[12].mxu1 %vm216_vm1, %v209_v14 }
 0x1f4   :  { %v1006_v22 = vpop.f32.mrb[0].mxu1 }
 0x1f5   :  { %v288_v23 = vadd.f32 %v1006_v22, %v215_v21  ;;  %v279_v24 = vpop.f32.mrb[1].mxu1 }
 0x1f6   :  { %v280_v25 = vadd.f32 %v279_v24, %v215_v21  ;;  %v1007_v26 = vpop.f32.mrb[2].mxu1  ;;  %v883_v24 = vld [vmem:[%s1449_s4 + $0x20] sm:$0xff] }
 0x1f7   :  { %v291_v27 = vadd.f32 %v1007_v26, %v215_v21  ;;  %v282_v28 = vpop.f32.mrb[3].mxu1  ;;  %v344_v30 = vmax.f32 %v288_v23, 0.0 }
 0x1f8   :  { %v283_v29 = vadd.f32 %v282_v28, %v215_v21  ;;  %v342_v34 = vmax.f32 %v280_v25, 0.0  ;;  %v884_v25 = vld [vmem:[%s1449_s4 + $0x28] sm:$0xff] }
 0x1f9   :  { %v345_v33 = vmax.f32 %v291_v27, 0.0  ;;  %v632_v26 = vpack.c.bf16 %v884_v25, %v883_v24  ;;  %v886_v27 = vld [vmem:[%s1449_s4 + $0x38] sm:$0xff] }
 0x1fa   :  { %v343_v35 = vmax.f32 %v283_v29, 0.0 }
 0x1fb   :  { %v359_v36 = vpack.c.bf16 %v345_v33, %v344_v30  ;;  %1072 = vmatprep.subr.bf16.mxu1 %v632_v26 }
 0x1fc   :  { %v358_v39 = vpack.c.bf16 %v343_v35, %v342_v34  ;;  %v1010_v40 = vpop.f32.mrb[4].mxu1 }
 0x1fd   :  { %v304_v41 = vadd.f32 %v1010_v40, %v215_v21  ;;  %v295_v42 = vpop.f32.mrb[5].mxu1 }
 0x1fe   :  { %v296_v45 = vadd.f32 %v295_v42, %v215_v21  ;;  %v1011_v46 = vpop.f32.mrb[6].mxu1  ;;  %1024 = vmatprep.mubr.msk.bf16.mxu1 %vm372_vm2, %v358_v39 }
 0x1ff   :  { %v307_v48 = vadd.f32 %v1011_v46, %v215_v21  ;;  %v298_v49 = vpop.f32.mrb[7].mxu1  ;;  %1025 = vmatmul.mubr.msk.bf16.vlgmr.msra.gmra.mrb[16].mxu1 %vm372_vm2, %v359_v36  ;;  %v348_v51 = vmax.f32 %v304_v41, 0.0 }
 0x200   :  { %v299_v50 = vadd.f32 %v298_v49, %v215_v21  ;;  %v346_v53 = vmax.f32 %v296_v45, 0.0  ;;  %1073 = vmatpush3.bf16.msra.mxu1 %v632_v26 }
 0x201   :  { %v349_v52 = vmax.f32 %v307_v48, 0.0 }
 0x202   :  { %v347_v54 = vmax.f32 %v299_v50, 0.0 }
 0x203   :  { %v361_v55 = vpack.c.bf16 %v349_v52, %v348_v51 }
 0x204   :  { %v360_v56 = vpack.c.bf16 %v347_v54, %v346_v53  ;;  %v1014_v57 = vpop.f32.mrb[8].mxu1 }
 0x205   :  { %v320_v58 = vadd.f32 %v1014_v57, %v215_v21  ;;  %v311_v59 = vpop.f32.mrb[9].mxu1 }
 0x206   :  { %v312_v60 = vadd.f32 %v311_v59, %v215_v21  ;;  %v1015_v61 = vpop.f32.mrb[10].mxu1  ;;  %1028 = vmatprep.mubr.msk.bf16.mxu1 %vm372_vm2, %v360_v56 }
 0x207   :  { %v323_v62 = vadd.f32 %v1015_v61, %v215_v21  ;;  %v314_v63 = vpop.f32.mrb[11].mxu1  ;;  %1029 = vmatmul.mubr.msk.bf16.gmra.mrb[20].mxu1 %vm372_vm2, %v361_v55  ;;  %v352_v1 = vmax.f32 %v320_v58, 0.0 }
 0x208   :  { %v315_v0 = vadd.f32 %v314_v63, %v215_v21  ;;  %v350_v3 = vmax.f32 %v312_v60, 0.0  ;;  %v504_v60 = vsub.s32 1, %v1378_v18 }
 0x209   :  { %v353_v2 = vmax.f32 %v323_v62, 0.0 }
 0x20a   :  { %v351_v4 = vmax.f32 %v315_v0, 0.0  ;;  %v505_v61 = vrot.slane %v1384_v20, %v504_v60 }
 0x20b   :  { %v363_v5 = vpack.c.bf16 %v353_v2, %v352_v1 }
 0x20c   :  { %v362_v6 = vpack.c.bf16 %v351_v4, %v350_v3  ;;  %v1018_v7 = vpop.f32.mrb[12].mxu1 }
 0x20d   :  { %v336_v8 = vadd.f32 %v1018_v7, %v215_v21  ;;  %v327_v9 = vpop.f32.mrb[13].mxu1 }
 0x20e   :  { %v328_v10 = vadd.f32 %v327_v9, %v215_v21  ;;  %v1019_v11 = vpop.f32.mrb[14].mxu1  ;;  %1032 = vmatprep.mubr.msk.bf16.mxu1 %vm372_vm2, %v362_v6 }
 0x20f   :  { %v339_v12 = vadd.f32 %v1019_v11, %v215_v21  ;;  %v330_v13 = vpop.f32.mrb[15].mxu1  ;;  %1033 = vmatmul.mubr.msk.bf16.gmra.mrb[24].mxu1 %vm372_vm2, %v363_v5  ;;  %v356_v15 = vmax.f32 %v336_v8, 0.0 }
 0x210   :  { %v331_v14 = vadd.f32 %v330_v13, %v215_v21  ;;  %v354_v17 = vmax.f32 %v328_v10, 0.0  ;;  %v885_v21 = vld [vmem:[%s1449_s4 + $0x30] sm:$0xff] }
 0x211   :  { %v357_v16 = vmax.f32 %v339_v12, 0.0  ;;  %v633_v28 = vpack.c.bf16 %v886_v27, %v885_v21 }
 0x212   :  { %v355_v19 = vmax.f32 %v331_v14, 0.0 }
 0x213   :  { %v365_v22 = vpack.c.bf16 %v357_v16, %v356_v15  ;;  %1074 = vmatprep.subr.bf16.mxu1 %v633_v28 }
 0x214   :  { %v364_v23 = vpack.c.bf16 %v355_v19, %v354_v17  ;;  %1075 = vmatpush3.bf16.msra.mxu1 %v633_v28 }
 0x216   :  { %1036 = vmatprep.mubr.msk.bf16.mxu1 %vm372_vm2, %v364_v23 }
 0x217   :  { %1037 = vmatmul.mubr.msk.bf16.gmra.mrb[28].mxu1 %vm372_vm2, %v365_v22 }
 0x2d2   :  { %v1026_v29 = vpop.f32.mrb[16].mxu1 }
 0x2d3   :  { %v431_v30 = vpop.f32.mrb[17].mxu1 }
 0x2d4   :  { %v1027_v33 = vpop.f32.mrb[18].mxu1 }
 0x2d5   :  { %v495_v34 = vpack.c.bf16 %v1027_v33, %v1026_v29  ;;  %v434_v35 = vpop.f32.mrb[19].mxu1 }
 0x2d6   :  { %v494_v36 = vpack.c.bf16 %v434_v35, %v431_v30 }
 0x2d8   :  { %1040 = vmatprep.subr.bf16.mxu0 %v494_v36 }
 0x2d9   :  { %1041 = vmatpush3.bf16.msra.mxu0 %v494_v36 }
 0x2da   :  { %v1030_v39 = vpop.f32.mrb[20].mxu1  ;;  %1042 = vmatprep.subr.bf16.mxu0 %v495_v34 }
 0x2db   :  { %v447_v40 = vpop.f32.mrb[21].mxu1 }
 0x2dc   :  { %v1031_v41 = vpop.f32.mrb[22].mxu1 }
 0x2dd   :  { %v497_v42 = vpack.c.bf16 %v1031_v41, %v1030_v39  ;;  %v450_v45 = vpop.f32.mrb[23].mxu1  ;;  %1043 = vmatpush3.bf16.msra.mxu0 %v495_v34 }
 0x2de   :  { %v496_v46 = vpack.c.bf16 %v450_v45, %v447_v40 }
 0x2e0   :  { %1044 = vmatprep.subr.bf16.mxu0 %v496_v46 }
 0x2e1   :  { %1045 = vmatpush3.bf16.msra.mxu0 %v496_v46 }
 0x2e2   :  { %v1034_v48 = vpop.f32.mrb[24].mxu1  ;;  %1046 = vmatprep.subr.bf16.mxu0 %v497_v42 }
 0x2e3   :  { %v463_v49 = vpop.f32.mrb[25].mxu1 }
 0x2e4   :  { %v1035_v50 = vpop.f32.mrb[26].mxu1 }
 0x2e5   :  { %v499_v51 = vpack.c.bf16 %v1035_v50, %v1034_v48  ;;  %v466_v52 = vpop.f32.mrb[27].mxu1  ;;  %1047 = vmatpush3.bf16.msra.mxu0 %v497_v42 }
 0x2e6   :  { %v498_v53 = vpack.c.bf16 %v466_v52, %v463_v49 }
 0x2e8   :  { %1048 = vmatprep.subr.bf16.mxu0 %v498_v53 }
 0x2e9   :  { %1049 = vmatpush3.bf16.msra.mxu0 %v498_v53 }
 0x2ea   :  { %v1038_v54 = vpop.f32.mrb[28].mxu1  ;;  %1050 = vmatprep.subr.bf16.mxu0 %v499_v51 }
 0x2eb   :  { %v479_v55 = vpop.f32.mrb[29].mxu1 }
 0x2ec   :  { %v1039_v56 = vpop.f32.mrb[30].mxu1 }
 0x2ed   :  { %v501_v57 = vpack.c.bf16 %v1039_v56, %v1038_v54  ;;  %v482_v58 = vpop.f32.mrb[31].mxu1  ;;  %1051 = vmatpush3.bf16.msra.mxu0 %v499_v51  ;;  %v1175_v56 = vmov 0.0  }
 0x2ee   :  { %v500_v59 = vpack.c.bf16 %v482_v58, %v479_v55  ;;  %1112 = vmatprep.subr.bf16.mxu1 %v1175_v56  ;;  %v77_v58 = vld [vmem:[%s1451_s6 + $0x8] sm:$0xff] }
 0x2f0   :  { %1052 = vmatprep.subr.bf16.mxu0 %v500_v59 }
 0x2f1   :  { %1053 = vmatpush3.bf16.msra.mxu0 %v500_v59  ;;  %v78_v59 = vld [vmem:[%s1451_s6 + $0x10] sm:$0xff] }
 0x2f2   :  { %1054 = vmatprep.subr.bf16.mxu0 %v501_v57 }
 0x2f5   :  { %1055 = vmatpush3.bf16.msra.mxu0 %v501_v57  ;;  %v76_v57 = vld [vmem:[%s1451_s6] sm:$0xff] }
 0x2f6   :  { %1092 = vmatprep.subr.bf16.mxu0 %v1175_v56  ;;  %v810_v60 = vpack.c.bf16 %v77_v58, %v76_v57 }
 0x2f8   :  { %1057 = vmatmul.mubr.bf16.vlgmr.msra.gmra.mrb[16].mxu0 %v1307_v31 }
 0x2f9   :  { %1060 = vmatprep.mubr.bf16.mxu0 %v1309_v32 }
 0x300   :  { %1061 = vmatmul.mubr.bf16.gmra.mrb[20].mxu0 %v1325_v37 }
 0x301   :  { %1064 = vmatprep.mubr.bf16.mxu0 %v1327_v38 }
 0x308   :  { %1065 = vmatmul.mubr.bf16.gmra.mrb[24].mxu0 %v1343_v43 }
 0x309   :  { %1068 = vmatprep.mubr.bf16.mxu0 %v1345_v44 }
 0x310   :  { %1069 = vmatmul.mubr.bf16.gmra.mrb[28].mxu0 %v1355_v47 }
 0x311   :  { %1108 = vmatprep.mubr.msk.bf16.mxu0 %vm1176_vm3, %v1175_v56 }
 0x3cb   :  { %v1058_v62 = vpop.f32.mrb[16].mxu0 }
 0x3cc   :  { %v549_v63 = vadd.f32 %v1058_v62, %v505_v61  ;;  %v540_v0 = vpop.f32.mrb[17].mxu0 }
 0x3cd   :  { %v541_v31 = vadd.f32 %v540_v0, %v505_v61  ;;  %v1059_v1 = vpop.f32.mrb[18].mxu0 }
 0x3ce   :  { %v552_v32 = vadd.f32 %v1059_v1, %v505_v61  ;;  %v543_v2 = vpop.f32.mrb[19].mxu0  ;;  %v605_v3 = vmax.f32 %v549_v63, 0.0 }
 0x3cf   :  { %v544_v37 = vadd.f32 %v543_v2, %v505_v61  ;;  %v603_v4 = vmax.f32 %v541_v31, 0.0 }
 0x3d0   :  { %v606_v38 = vmax.f32 %v552_v32, 0.0 }
 0x3d1   :  { %v604_v43 = vmax.f32 %v544_v37, 0.0 }
 0x3d2   :  { %v620_v5 = vpack.c.bf16 %v606_v38, %v605_v3 }
 0x3d3   :  { %v619_v44 = vpack.c.bf16 %v604_v43, %v603_v4  ;;  %v1062_v6 = vpop.f32.mrb[20].mxu0 }
 0x3d4   :  { %v565_v47 = vadd.f32 %v1062_v6, %v505_v61  ;;  %v556_v7 = vpop.f32.mrb[21].mxu0 }
 0x3d5   :  { %v557_v8 = vadd.f32 %v556_v7, %v505_v61  ;;  %v1063_v9 = vpop.f32.mrb[22].mxu0  ;;  %1076 = vmatprep.mubr.msk.bf16.mxu1 %vm372_vm2, %v619_v44 }
 0x3d6   :  { %v568_v10 = vadd.f32 %v1063_v9, %v505_v61  ;;  %v559_v11 = vpop.f32.mrb[23].mxu0  ;;  %1077 = vmatmul.mubr.msk.bf16.vlgmr.msra.gmra.mrb[32].mxu1 %vm372_vm2, %v620_v5  ;;  %v609_v13 = vmax.f32 %v565_v47, 0.0 }
 0x3d7   :  { %v560_v12 = vadd.f32 %v559_v11, %v505_v61  ;;  %v607_v15 = vmax.f32 %v557_v8, 0.0  ;;  %1113 = vmatpush3.bf16.msra.mxu1 %v810_v60 }
 0x3d8   :  { %v610_v14 = vmax.f32 %v568_v10, 0.0  ;;  %1114 = vmatprep.subr.bf16.mxu1 %v1175_v56 }
 0x3d9   :  { %v608_v16 = vmax.f32 %v560_v12, 0.0 }
 0x3da   :  { %v622_v17 = vpack.c.bf16 %v610_v14, %v609_v13 }
 0x3db   :  { %v621_v19 = vpack.c.bf16 %v608_v16, %v607_v15  ;;  %v1066_v22 = vpop.f32.mrb[24].mxu0  ;;  %v755_v16 = vld [vmem:[#allocation2] sm:$0xff] }
 0x3dc   :  { %v581_v23 = vadd.f32 %v1066_v22, %v505_v61  ;;  %v572_v24 = vpop.f32.mrb[25].mxu0 }
 0x3dd   :  { %v573_v25 = vadd.f32 %v572_v24, %v505_v61  ;;  %v1067_v21 = vpop.f32.mrb[26].mxu0  ;;  %1080 = vmatprep.mubr.msk.bf16.mxu1 %vm372_vm2, %v621_v19  ;;  %v767_v19 = vsub.s32 2, %v1378_v18 }
 0x3de   :  { %v584_v26 = vadd.f32 %v1067_v21, %v505_v61  ;;  %v575_v27 = vpop.f32.mrb[27].mxu0  ;;  %1081 = vmatmul.mubr.msk.bf16.gmra.mrb[36].mxu1 %vm372_vm2, %v622_v17  ;;  %v613_v29 = vmax.f32 %v581_v23, 0.0  ;;  %v756_v17 = vpack.c.bf16 %v755_v16, %v755_v16 }
 0x3df   :  { %v576_v28 = vadd.f32 %v575_v27, %v505_v61  ;;  %v611_v33 = vmax.f32 %v573_v25, 0.0  ;;  %v768_v22 = vrot.slane %v1384_v20, %v767_v19 }
 0x3e0   :  { %v614_v30 = vmax.f32 %v584_v26, 0.0 }
 0x3e1   :  { %v612_v34 = vmax.f32 %v576_v28, 0.0  ;;  %v895_v28 = vld [vmem:[%s1451_s6 + $0x20] ss:$0 sm:$0xff] }
 0x3e2   :  { %v624_v35 = vpack.c.bf16 %v614_v30, %v613_v29 }
 0x3e3   :  { %v623_v36 = vpack.c.bf16 %v612_v34, %v611_v33  ;;  %v1070_v39 = vpop.f32.mrb[28].mxu0 }
 0x3e4   :  { %v597_v40 = vadd.f32 %v1070_v39, %v505_v61  ;;  %v588_v41 = vpop.f32.mrb[29].mxu0 }
 0x3e5   :  { %v589_v42 = vadd.f32 %v588_v41, %v505_v61  ;;  %v1071_v45 = vpop.f32.mrb[30].mxu0  ;;  %1084 = vmatprep.mubr.msk.bf16.mxu1 %vm372_vm2, %v623_v36 }
 0x3e6   :  { %v600_v46 = vadd.f32 %v1071_v45, %v505_v61  ;;  %v591_v48 = vpop.f32.mrb[31].mxu0  ;;  %1085 = vmatmul.mubr.msk.bf16.gmra.mrb[40].mxu1 %vm372_vm2, %v624_v35  ;;  %v617_v50 = vmax.f32 %v597_v40, 0.0 }
 0x3e7   :  { %v592_v49 = vadd.f32 %v591_v48, %v505_v61  ;;  %v615_v52 = vmax.f32 %v589_v42, 0.0  ;;  %v79_v61 = vld [vmem:[%s1451_s6 + $0x18] sm:$0xff] }
 0x3e8   :  { %v618_v51 = vmax.f32 %v600_v46, 0.0  ;;  %v811_v62 = vpack.c.bf16 %v79_v61, %v78_v59 }
 0x3e9   :  { %v616_v53 = vmax.f32 %v592_v49, 0.0 }
 0x3ea   :  { %v626_v54 = vpack.c.bf16 %v618_v51, %v617_v50  ;;  %1115 = vmatpush3.bf16.msra.mxu1 %v811_v62 }
 0x3eb   :  { %v625_v55 = vpack.c.bf16 %v616_v53, %v615_v52 }
 0x3ed   :  { %1088 = vmatprep.mubr.msk.bf16.mxu1 %vm372_vm2, %v625_v55 }
 0x3ee   :  { %1089 = vmatmul.mubr.msk.bf16.gmra.mrb[44].mxu1 %vm372_vm2, %v626_v54 }
 0x3ef   :  { %1116 = vmatprep.mubr.msk.bf16.mxu1 %vm1176_vm3, %v1175_v56 }
 0x4a9   :  { %v1078_v63 = vpop.f32.mrb[32].mxu1 }
 0x4aa   :  { %v692_v0 = vpop.f32.mrb[33].mxu1 }
 0x4ab   :  { %v1079_v31 = vpop.f32.mrb[34].mxu1 }
 0x4ac   :  { %v758_v1 = vpack.c.bf16 %v1079_v31, %v1078_v63  ;;  %v695_v32 = vpop.f32.mrb[35].mxu1 }
 0x4ad   :  { %v757_v2 = vpack.c.bf16 %v695_v32, %v692_v0 }
 0x4af   :  { %1093 = vmatpush3.bf16.msra.mxu0 %v757_v2 }
 0x4b0   :  { %1094 = vmatprep.subr.bf16.mxu0 %v1175_v56 }
 0x4b1   :  { %v1082_v37 = vpop.f32.mrb[36].mxu1 }
 0x4b2   :  { %v708_v3 = vpop.f32.mrb[37].mxu1 }
 0x4b3   :  { %v1083_v38 = vpop.f32.mrb[38].mxu1  ;;  %1095 = vmatpush3.bf16.msra.mxu0 %v758_v1 }
 0x4b4   :  { %v760_v4 = vpack.c.bf16 %v1083_v38, %v1082_v37  ;;  %v711_v43 = vpop.f32.mrb[39].mxu1  ;;  %1096 = vmatprep.subr.bf16.mxu0 %v1175_v56 }
 0x4b5   :  { %v759_v5 = vpack.c.bf16 %v711_v43, %v708_v3 }
 0x4b7   :  { %1097 = vmatpush3.bf16.msra.mxu0 %v759_v5 }
 0x4b8   :  { %1098 = vmatprep.subr.bf16.mxu0 %v1175_v56 }
 0x4b9   :  { %v1086_v44 = vpop.f32.mrb[40].mxu1 }
 0x4ba   :  { %v724_v6 = vpop.f32.mrb[41].mxu1 }
 0x4bb   :  { %v1087_v47 = vpop.f32.mrb[42].mxu1  ;;  %1099 = vmatpush3.bf16.msra.mxu0 %v760_v4 }
 0x4bc   :  { %v762_v7 = vpack.c.bf16 %v1087_v47, %v1086_v44  ;;  %v727_v8 = vpop.f32.mrb[43].mxu1  ;;  %1100 = vmatprep.subr.bf16.mxu0 %v1175_v56 }
 0x4bd   :  { %v761_v9 = vpack.c.bf16 %v727_v8, %v724_v6 }
 0x4bf   :  { %1101 = vmatpush3.bf16.msra.mxu0 %v761_v9 }
 0x4c0   :  { %1102 = vmatprep.subr.bf16.mxu0 %v1175_v56 }
 0x4c1   :  { %v1090_v10 = vpop.f32.mrb[44].mxu1 }
 0x4c2   :  { %v740_v11 = vpop.f32.mrb[45].mxu1 }
 0x4c3   :  { %v1091_v12 = vpop.f32.mrb[46].mxu1  ;;  %1103 = vmatpush3.bf16.msra.mxu0 %v762_v7 }
 0x4c4   :  { %v764_v13 = vpack.c.bf16 %v1091_v12, %v1090_v10  ;;  %v743_v14 = vpop.f32.mrb[47].mxu1  ;;  %1104 = vmatprep.subr.bf16.mxu0 %v1175_v56 }
 0x4c5   :  { %v763_v15 = vpack.c.bf16 %v743_v14, %v740_v11 }
 0x4c7   :  { %1105 = vmatpush3.bf16.msra.mxu0 %v763_v15 }
 0x4c8   :  { %1106 = vmatprep.subr.bf16.mxu0 %v1175_v56 }
 0x4cb   :  { %1107 = vmatpush3.bf16.msra.mxu0 %v764_v13 }
 0x4ce   :  { %1109 = vmatmul.mubr.bf16.vlgmr.msra.gmra.mrb[32].mxu0 %v756_v17 }
 0x5a1   :  { %v803_v23 = vpop.f32.mrb[32].mxu0 }
 0x5a2   :  { %v804_v24 = vadd.f32 %v803_v23, %v768_v22  ;;  %v1110_v25 = vpop.f32.mrb[33].mxu0 }
 0x5a3   :  { %v806_v21 = vpop.f32.mrb[34].mxu0 }
 0x5a4   :  { %v809_v26 = vpack.c.bf16 %v804_v24, %v804_v24  ;;  %v1111_v27 = vpop.f32.mrb[35].mxu0 }
 0x5a6   :  { %1117 = vmatmul.mubr.msk.bf16.vlgmr.msra.gmra.mrb[48].mxu1 %vm372_vm2, %v809_v26 }
 0x679   :  { %v853_v29 = vpop.f32.mrb[48].mxu1 }
 0x67a   :  { %v854_v30 = vadd.f32 %v895_v28, %v853_v29  ;;  %v1118_v33 = vpop.f32.mrb[49].mxu1 }
 0x67b   :  { %v856_v34 = vpop.f32.mrb[50].mxu1 }
 0x67c   :  { %860 = vst.msk [vmem:[%s1452_s7] sm:$0xff] %vm859_vm4, %v854_v30  ;;  %v1119_v18 = vpop.f32.mrb[51].mxu1 }
 0x67d   :  { %865 = vsyncpa [#allocation3], 1 }
 0x67e   :  { %866 = vsyncpa [#allocation5], 1 }

</bundles_post_ra>
